<compile_context>
chip_gen: v5e
topology: v5e:2x2
jax: 0.10.0
libtpu: 0.0.40
codegen_flags: <defaults>
</compile_context>

<pallas_src>
import functools

import jax
import jax.numpy as jnp
from jax.experimental import pallas as pl
from jax.experimental.pallas import tpu as pltpu

NEG_SLOPE = 0.2   # LeakyReLU negative slope (alpha)
NEG_INF = -1e30


def _gat_fused_kernel(x_ref, adj_ref, w_ref, out_ref, *, num_heads, out_feats):
    """Single-step fused GAT layer.

    x_ref   : (N, F_in) float32        node features
    adj_ref : (N_dst, N_src) int8      in-edge mask, adj_in[v,u]=1 iff u->v
    w_ref   : (F_in, 2*H*D + 2*H)      [ Wf | Wres | Wf@attn_l | Wf@attn_r ]
    out_ref : (N, H*D) float32         flattened output
    """
    H, D = num_heads, out_feats
    HD = H * D

    x = x_ref[...]
    w = w_ref[...]

    # One wide MXU call produces projection, residual and both logit terms.
    y = jnp.dot(x, w, preferred_element_type=jnp.float32)    # (N, 2HD + 2H)
    z = y[:, :HD]                            # (N, HD)  per-head projections
    res = y[:, HD:2 * HD]                    # (N, HD)  residual branch
    el = y[:, 2 * HD:2 * HD + H]             # (N, H)   source logit terms
    er = y[:, 2 * HD + H:2 * HD + 2 * H]     # (N, H)   destination logit terms

    adj_i = adj_ref[...]                     # (N_dst, N_src) int8, 0/1
    mask = adj_i != 0
    adj_f = adj_i.astype(jnp.float32)

    el_t = el.T                              # (H, N_src) -- one tiny transpose

    rst_parts = []
    for h in range(H):                       # H is a small static python int
        # Logits already in (dst, src) orientation -> no N x N transpose later.
        e = er[:, h:h + 1] + el_t[h:h + 1, :]                # (N_dst, N_src)
        e = jnp.where(e >= 0, e, NEG_SLOPE * e)              # LeakyReLU
        e_m = jnp.where(mask, e, jnp.float32(NEG_INF))
        e_max = jnp.max(e_m, axis=-1, keepdims=True)         # (N_dst, 1)
        p = adj_f * jnp.exp(e_m - e_max)                     # mask as multiply
        denom = jnp.sum(p, axis=-1, keepdims=True)           # (N_dst, 1)
        inv = jnp.where(denom > 0,
                        pl.reciprocal(denom, approx=True),
                        jnp.zeros_like(denom))
        a = p * inv                                          # (N_dst, N_src)
        # Aggregation: contraction over the source axis directly on the MXU.
        rst_parts.append(jnp.dot(a, z[:, h * D:(h + 1) * D],
                                 preferred_element_type=jnp.float32))

    # Single lane-dense store of the flattened (N, H*D) result (+ residual).
    out_ref[...] = (res + jnp.concatenate(rst_parts, axis=-1)).astype(out_ref.dtype)


def nonlocal_gcn_layer(x, adj, Wf, attn_l, attn_r, Wres, *, num_heads, out_feats):
    """x: (N, F_in), adj[u, v] = 1 iff edge u -> v (any numeric dtype),
    Wf/Wres: (F_in, H*D), attn_l/attn_r: (H, D).

    Returns the 'flatten' aggregation: (N, H*D) float32.
    """
    N, F_in = x.shape
    H, D = num_heads, out_feats
    HD = H * D

    # Fold attn_l / attn_r into the projection: el / er become matmul columns.
    wf_hd = Wf.reshape(F_in, H, D)
    w_el = jnp.einsum("fhd,hd->fh", wf_hd, attn_l)            # (F_in, H)
    w_er = jnp.einsum("fhd,hd->fh", wf_hd, attn_r)            # (F_in, H)
    w_big = jnp.concatenate([Wf, Wres, w_el, w_er], axis=1)   # (F_in, 2HD+2H)

    # In-edge adjacency (dst, src) as int8 -> 4x less O(N^2) DMA traffic.
    # (Callers with big graphs can supply this layout directly.)
    adj_in = (adj.T != 0).astype(jnp.int8)

    kernel = functools.partial(_gat_fused_kernel, num_heads=H, out_feats=D)

    # TODO(synk): for large N, add a destination-tile grid axis (adj column
    # blocks + (T_dst, H*D) output blocks) and a flash-style online softmax so
    # the N x N working set fits v7x's 64 MiB VMEM; at these shapes one fused
    # step is strictly faster than per-head / per-tile grid overhead.
    out = pl.pallas_call(
        kernel,
        out_shape=jax.ShapeDtypeStruct((N, HD), jnp.float32),
        grid=(1,),
        in_specs=[
            pl.BlockSpec((N, F_in), lambda i: (0, 0)),            # x (full)
            pl.BlockSpec((N, N), lambda i: (0, 0)),               # adj_in (full)
            pl.BlockSpec((F_in, 2 * HD + 2 * H), lambda i: (0, 0)),  # packed W
        ],
        out_specs=pl.BlockSpec((N, HD), lambda i: (0, 0)),
        compiler_params=pltpu.CompilerParams(
            dimension_semantics=("arbitrary",)),
    )(x, adj_in, w_big)
    return out


def _reference(x, adj, Wf, attn_l, attn_r, Wres, num_heads, out_feats):
    N = x.shape[0]
    H, D = num_heads, out_feats
    z = (x @ Wf).reshape(N, H, D)
    el = (z * attn_l[None]).sum(-1)                       # (N, H)
    er = (z * attn_r[None]).sum(-1)                       # (N, H)
    e = el[:, None, :] + er[None, :, :]                   # (N_src, N_dst, H)
    e = jnp.where(e >= 0, e, NEG_SLOPE * e)
    mask = (adj > 0)[:, :, None]
    e_m = jnp.where(mask, e, NEG_INF)
    e_max = e_m.max(axis=0, keepdims=True)
    p = jnp.where(mask, jnp.exp(e_m - e_max), 0.0)
    denom = p.sum(axis=0, keepdims=True)
    a = p / jnp.where(denom > 0, denom, 1.0)
    rst = jnp.einsum("uvh,uhd->vhd", a, z)
    res = (x @ Wres).reshape(N, H, D)
    return (rst + res).reshape(N, H * D)


if __name__ == "__main__":
    # Small shapes consistent with the module's forward.
    N = 8          # number of graph nodes
    F_IN = 32      # in_feats
    D = 16         # out_feats
    H = 4          # num_heads

    key = jax.random.PRNGKey(0)
    k_x, k_adj, k_wf, k_al, k_ar, k_wres = jax.random.split(key, 6)

    x = jax.random.normal(k_x, (N, F_IN), dtype=jnp.float32)

    # Random sparse directed graph with self-loops (dense adjacency, u -> v).
    adj = (jax.random.uniform(k_adj, (N, N)) < 0.4).astype(jnp.float32)
    adj = jnp.maximum(adj, jnp.eye(N, dtype=jnp.float32))

    # Deterministic "xavier_normal_(gain=sqrt(2))"-style parameter init.
    gain = jnp.sqrt(2.0)

    def xavier(k, shape, fan_in, fan_out):
        std = gain * jnp.sqrt(2.0 / (fan_in + fan_out))
        return std * jax.random.normal(k, shape, dtype=jnp.float32)

    # fc.weight is (H*D, F_in) in torch; we keep its transpose (F_in, H*D).
    Wf = xavier(k_wf, (F_IN, H * D), F_IN, H * D)
    attn_l = xavier(k_al, (H, D), D, H)     # torch param (1, H, D)
    attn_r = xavier(k_ar, (H, D), D, H)
    Wres = xavier(k_wres, (F_IN, H * D), F_IN, H * D)   # res_fc (Linear, no bias)

    layer = jax.jit(functools.partial(nonlocal_gcn_layer,
                                      num_heads=H, out_feats=D))
    out = layer(x, adj, Wf, attn_l, attn_r, Wres)
    out = jax.block_until_ready(out)

    ref = _reference(x, adj, Wf, attn_l, attn_r, Wres, H, D)
    assert out.shape == (N, H * D)
    # Tolerance accounts for the EUP approximate reciprocal in the softmax.
    assert jnp.allclose(out, ref, rtol=5e-3, atol=5e-3), (
        float(jnp.max(jnp.abs(out - ref))))

    print("KERNEL_OK")
</pallas_src>

<mosaic_0001>
module attributes {stable_mosaic.version = 11 : i64} {
  func.func @_gat_fused_kernel(%arg0: i32, %arg1: memref<8x32xf32, #tpu.memory_space<vmem>>, %arg2: memref<8x8xi8, #tpu.memory_space<vmem>>, %arg3: memref<32x136xf32, #tpu.memory_space<vmem>>, %arg4: memref<8x64xf32, #tpu.memory_space<vmem>>) attributes {dimension_semantics = [#tpu.dimension_semantics<arbitrary>], iteration_bounds = array<i64: 1>, scalar_prefetch = 0 : i64, scratch_operands = 0 : i64, tpu.core_type = #tpu.core_type<tc>, window_params = [{pipeline_mode = #tpu.pipeline_mode<synchronous>, transform_indices = @transform_0, window_bounds = array<i64: 8, 32>}, {pipeline_mode = #tpu.pipeline_mode<synchronous>, transform_indices = @transform_1, window_bounds = array<i64: 8, 8>}, {pipeline_mode = #tpu.pipeline_mode<synchronous>, transform_indices = @transform_2, window_bounds = array<i64: 32, 136>}, {pipeline_mode = #tpu.pipeline_mode<synchronous>, transform_indices = @transform_3, window_bounds = array<i64: 8, 64>}]} {
    %c0 = arith.constant 0 : index
    %c0_0 = arith.constant 0 : index
    %0 = vector.load %arg1[%c0, %c0_0] : memref<8x32xf32, #tpu.memory_space<vmem>>, vector<8x32xf32>
    %c0_1 = arith.constant 0 : index
    %c0_2 = arith.constant 0 : index
    %1 = vector.load %arg3[%c0_1, %c0_2] : memref<32x136xf32, #tpu.memory_space<vmem>>, vector<32x136xf32>
    %cst = arith.constant dense<0.000000e+00> : vector<8x136xf32>
    %2 = tpu.matmul %0, %1, %cst {dimension_numbers = #tpu.dot_dimension_numbers<[1], [0], [0], [1], [0, 0, 1, 1], [], []>} : vector<8x32xf32>, vector<32x136xf32>, vector<8x136xf32> -> vector<8x136xf32>
    %3 = vector.extract_strided_slice %2 {offsets = [0, 0], sizes = [8, 64], strides = [1, 1]} : vector<8x136xf32> to vector<8x64xf32>
    %4 = vector.extract_strided_slice %2 {offsets = [0, 64], sizes = [8, 64], strides = [1, 1]} : vector<8x136xf32> to vector<8x64xf32>
    %5 = vector.extract_strided_slice %2 {offsets = [0, 128], sizes = [8, 4], strides = [1, 1]} : vector<8x136xf32> to vector<8x4xf32>
    %6 = vector.extract_strided_slice %2 {offsets = [0, 132], sizes = [8, 4], strides = [1, 1]} : vector<8x136xf32> to vector<8x4xf32>
    %c0_3 = arith.constant 0 : index
    %c0_4 = arith.constant 0 : index
    %7 = vector.load %arg2[%c0_3, %c0_4] : memref<8x8xi8, #tpu.memory_space<vmem>>, vector<8x8xi8>
    %c0_i8 = arith.constant 0 : i8
    %8 = vector.broadcast %c0_i8 : i8 to vector<8x8xi8>
    %9 = arith.cmpi ne, %7, %8 : vector<8x8xi8>
    %10 = arith.sitofp %7 : vector<8x8xi8> to vector<8x8xf32>
    %11 = tpu.transpose %5, [1, 0] : vector<8x4xf32> -> vector<4x8xf32>
    %12 = vector.extract_strided_slice %6 {offsets = [0, 0], sizes = [8, 1], strides = [1, 1]} : vector<8x4xf32> to vector<8x1xf32>
    %13 = vector.extract_strided_slice %11 {offsets = [0, 0], sizes = [1, 8], strides = [1, 1]} : vector<4x8xf32> to vector<1x8xf32>
    %14 = vector.broadcast %12 : vector<8x1xf32> to vector<8x8xf32>
    %15 = vector.broadcast %13 : vector<1x8xf32> to vector<8x8xf32>
    %16 = arith.addf %14, %15 : vector<8x8xf32>
    %cst_5 = arith.constant 0.000000e+00 : f32
    %17 = vector.broadcast %cst_5 : f32 to vector<8x8xf32>
    %18 = arith.cmpf oge, %16, %17 : vector<8x8xf32>
    %cst_6 = arith.constant 2.000000e-01 : f32
    %19 = vector.broadcast %cst_6 : f32 to vector<8x8xf32>
    %20 = arith.mulf %19, %16 : vector<8x8xf32>
    %21 = arith.select %18, %16, %20 : vector<8x8xi1>, vector<8x8xf32>
    %cst_7 = arith.constant -1.000000e+30 : f32
    %22 = vector.broadcast %cst_7 : f32 to vector<8x8xf32>
    %23 = arith.select %9, %21, %22 : vector<8x8xi1>, vector<8x8xf32>
    %cst_8 = arith.constant dense<0xFF800000> : vector<8xf32>
    %24 = vector.multi_reduction <maximumf>, %23, %cst_8 [1] : vector<8x8xf32> to vector<8xf32>
    %25 = vector.shape_cast %24 : vector<8xf32> to vector<8x1xf32>
    %26 = vector.broadcast %25 : vector<8x1xf32> to vector<8x8xf32>
    %27 = arith.subf %23, %26 : vector<8x8xf32>
    %28 = math.exp %27 : vector<8x8xf32>
    %29 = arith.mulf %10, %28 : vector<8x8xf32>
    %cst_9 = arith.constant dense<0.000000e+00> : vector<8xf32>
    %30 = vector.multi_reduction <add>, %29, %cst_9 [1] : vector<8x8xf32> to vector<8xf32>
    %31 = vector.shape_cast %30 : vector<8xf32> to vector<8x1xf32>
    %cst_10 = arith.constant 0.000000e+00 : f32
    %32 = vector.broadcast %cst_10 : f32 to vector<8x1xf32>
    %33 = arith.cmpf ogt, %31, %32 : vector<8x1xf32>
    %34 = tpu.reciprocal %31 {approx = true} : vector<8x1xf32> -> vector<8x1xf32>
    %cst_11 = arith.constant 0.000000e+00 : f32
    %35 = vector.broadcast %cst_11 : f32 to vector<8x1xf32>
    %36 = arith.select %33, %34, %35 : vector<8x1xi1>, vector<8x1xf32>
    %37 = vector.broadcast %36 : vector<8x1xf32> to vector<8x8xf32>
    %38 = arith.mulf %29, %37 : vector<8x8xf32>
    %39 = vector.extract_strided_slice %3 {offsets = [0, 0], sizes = [8, 16], strides = [1, 1]} : vector<8x64xf32> to vector<8x16xf32>
    %cst_12 = arith.constant dense<0.000000e+00> : vector<8x16xf32>
    %40 = tpu.matmul %38, %39, %cst_12 {dimension_numbers = #tpu.dot_dimension_numbers<[1], [0], [0], [1], [0, 0, 1, 1], [], []>} : vector<8x8xf32>, vector<8x16xf32>, vector<8x16xf32> -> vector<8x16xf32>
    %41 = vector.extract_strided_slice %6 {offsets = [0, 1], sizes = [8, 1], strides = [1, 1]} : vector<8x4xf32> to vector<8x1xf32>
    %42 = vector.extract_strided_slice %11 {offsets = [1, 0], sizes = [1, 8], strides = [1, 1]} : vector<4x8xf32> to vector<1x8xf32>
    %43 = vector.broadcast %41 : vector<8x1xf32> to vector<8x8xf32>
    %44 = vector.broadcast %42 : vector<1x8xf32> to vector<8x8xf32>
    %45 = arith.addf %43, %44 : vector<8x8xf32>
    %cst_13 = arith.constant 0.000000e+00 : f32
    %46 = vector.broadcast %cst_13 : f32 to vector<8x8xf32>
    %47 = arith.cmpf oge, %45, %46 : vector<8x8xf32>
    %cst_14 = arith.constant 2.000000e-01 : f32
    %48 = vector.broadcast %cst_14 : f32 to vector<8x8xf32>
    %49 = arith.mulf %48, %45 : vector<8x8xf32>
    %50 = arith.select %47, %45, %49 : vector<8x8xi1>, vector<8x8xf32>
    %cst_15 = arith.constant -1.000000e+30 : f32
    %51 = vector.broadcast %cst_15 : f32 to vector<8x8xf32>
    %52 = arith.select %9, %50, %51 : vector<8x8xi1>, vector<8x8xf32>
    %cst_16 = arith.constant dense<0xFF800000> : vector<8xf32>
    %53 = vector.multi_reduction <maximumf>, %52, %cst_16 [1] : vector<8x8xf32> to vector<8xf32>
    %54 = vector.shape_cast %53 : vector<8xf32> to vector<8x1xf32>
    %55 = vector.broadcast %54 : vector<8x1xf32> to vector<8x8xf32>
    %56 = arith.subf %52, %55 : vector<8x8xf32>
    %57 = math.exp %56 : vector<8x8xf32>
    %58 = arith.mulf %10, %57 : vector<8x8xf32>
    %cst_17 = arith.constant dense<0.000000e+00> : vector<8xf32>
    %59 = vector.multi_reduction <add>, %58, %cst_17 [1] : vector<8x8xf32> to vector<8xf32>
    %60 = vector.shape_cast %59 : vector<8xf32> to vector<8x1xf32>
    %cst_18 = arith.constant 0.000000e+00 : f32
    %61 = vector.broadcast %cst_18 : f32 to vector<8x1xf32>
    %62 = arith.cmpf ogt, %60, %61 : vector<8x1xf32>
    %63 = tpu.reciprocal %60 {approx = true} : vector<8x1xf32> -> vector<8x1xf32>
    %cst_19 = arith.constant 0.000000e+00 : f32
    %64 = vector.broadcast %cst_19 : f32 to vector<8x1xf32>
    %65 = arith.select %62, %63, %64 : vector<8x1xi1>, vector<8x1xf32>
    %66 = vector.broadcast %65 : vector<8x1xf32> to vector<8x8xf32>
    %67 = arith.mulf %58, %66 : vector<8x8xf32>
    %68 = vector.extract_strided_slice %3 {offsets = [0, 16], sizes = [8, 16], strides = [1, 1]} : vector<8x64xf32> to vector<8x16xf32>
    %cst_20 = arith.constant dense<0.000000e+00> : vector<8x16xf32>
    %69 = tpu.matmul %67, %68, %cst_20 {dimension_numbers = #tpu.dot_dimension_numbers<[1], [0], [0], [1], [0, 0, 1, 1], [], []>} : vector<8x8xf32>, vector<8x16xf32>, vector<8x16xf32> -> vector<8x16xf32>
    %70 = vector.extract_strided_slice %6 {offsets = [0, 2], sizes = [8, 1], strides = [1, 1]} : vector<8x4xf32> to vector<8x1xf32>
    %71 = vector.extract_strided_slice %11 {offsets = [2, 0], sizes = [1, 8], strides = [1, 1]} : vector<4x8xf32> to vector<1x8xf32>
    %72 = vector.broadcast %70 : vector<8x1xf32> to vector<8x8xf32>
    %73 = vector.broadcast %71 : vector<1x8xf32> to vector<8x8xf32>
    %74 = arith.addf %72, %73 : vector<8x8xf32>
    %cst_21 = arith.constant 0.000000e+00 : f32
    %75 = vector.broadcast %cst_21 : f32 to vector<8x8xf32>
    %76 = arith.cmpf oge, %74, %75 : vector<8x8xf32>
    %cst_22 = arith.constant 2.000000e-01 : f32
    %77 = vector.broadcast %cst_22 : f32 to vector<8x8xf32>
    %78 = arith.mulf %77, %74 : vector<8x8xf32>
    %79 = arith.select %76, %74, %78 : vector<8x8xi1>, vector<8x8xf32>
    %cst_23 = arith.constant -1.000000e+30 : f32
    %80 = vector.broadcast %cst_23 : f32 to vector<8x8xf32>
    %81 = arith.select %9, %79, %80 : vector<8x8xi1>, vector<8x8xf32>
    %cst_24 = arith.constant dense<0xFF800000> : vector<8xf32>
    %82 = vector.multi_reduction <maximumf>, %81, %cst_24 [1] : vector<8x8xf32> to vector<8xf32>
    %83 = vector.shape_cast %82 : vector<8xf32> to vector<8x1xf32>
    %84 = vector.broadcast %83 : vector<8x1xf32> to vector<8x8xf32>
    %85 = arith.subf %81, %84 : vector<8x8xf32>
    %86 = math.exp %85 : vector<8x8xf32>
    %87 = arith.mulf %10, %86 : vector<8x8xf32>
    %cst_25 = arith.constant dense<0.000000e+00> : vector<8xf32>
    %88 = vector.multi_reduction <add>, %87, %cst_25 [1] : vector<8x8xf32> to vector<8xf32>
    %89 = vector.shape_cast %88 : vector<8xf32> to vector<8x1xf32>
    %cst_26 = arith.constant 0.000000e+00 : f32
    %90 = vector.broadcast %cst_26 : f32 to vector<8x1xf32>
    %91 = arith.cmpf ogt, %89, %90 : vector<8x1xf32>
    %92 = tpu.reciprocal %89 {approx = true} : vector<8x1xf32> -> vector<8x1xf32>
    %cst_27 = arith.constant 0.000000e+00 : f32
    %93 = vector.broadcast %cst_27 : f32 to vector<8x1xf32>
    %94 = arith.select %91, %92, %93 : vector<8x1xi1>, vector<8x1xf32>
    %95 = vector.broadcast %94 : vector<8x1xf32> to vector<8x8xf32>
    %96 = arith.mulf %87, %95 : vector<8x8xf32>
    %97 = vector.extract_strided_slice %3 {offsets = [0, 32], sizes = [8, 16], strides = [1, 1]} : vector<8x64xf32> to vector<8x16xf32>
    %cst_28 = arith.constant dense<0.000000e+00> : vector<8x16xf32>
    %98 = tpu.matmul %96, %97, %cst_28 {dimension_numbers = #tpu.dot_dimension_numbers<[1], [0], [0], [1], [0, 0, 1, 1], [], []>} : vector<8x8xf32>, vector<8x16xf32>, vector<8x16xf32> -> vector<8x16xf32>
    %99 = vector.extract_strided_slice %6 {offsets = [0, 3], sizes = [8, 1], strides = [1, 1]} : vector<8x4xf32> to vector<8x1xf32>
    %100 = vector.extract_strided_slice %11 {offsets = [3, 0], sizes = [1, 8], strides = [1, 1]} : vector<4x8xf32> to vector<1x8xf32>
    %101 = vector.broadcast %99 : vector<8x1xf32> to vector<8x8xf32>
    %102 = vector.broadcast %100 : vector<1x8xf32> to vector<8x8xf32>
    %103 = arith.addf %101, %102 : vector<8x8xf32>
    %cst_29 = arith.constant 0.000000e+00 : f32
    %104 = vector.broadcast %cst_29 : f32 to vector<8x8xf32>
    %105 = arith.cmpf oge, %103, %104 : vector<8x8xf32>
    %cst_30 = arith.constant 2.000000e-01 : f32
    %106 = vector.broadcast %cst_30 : f32 to vector<8x8xf32>
    %107 = arith.mulf %106, %103 : vector<8x8xf32>
    %108 = arith.select %105, %103, %107 : vector<8x8xi1>, vector<8x8xf32>
    %cst_31 = arith.constant -1.000000e+30 : f32
    %109 = vector.broadcast %cst_31 : f32 to vector<8x8xf32>
    %110 = arith.select %9, %108, %109 : vector<8x8xi1>, vector<8x8xf32>
    %cst_32 = arith.constant dense<0xFF800000> : vector<8xf32>
    %111 = vector.multi_reduction <maximumf>, %110, %cst_32 [1] : vector<8x8xf32> to vector<8xf32>
    %112 = vector.shape_cast %111 : vector<8xf32> to vector<8x1xf32>
    %113 = vector.broadcast %112 : vector<8x1xf32> to vector<8x8xf32>
    %114 = arith.subf %110, %113 : vector<8x8xf32>
    %115 = math.exp %114 : vector<8x8xf32>
    %116 = arith.mulf %10, %115 : vector<8x8xf32>
    %cst_33 = arith.constant dense<0.000000e+00> : vector<8xf32>
    %117 = vector.multi_reduction <add>, %116, %cst_33 [1] : vector<8x8xf32> to vector<8xf32>
    %118 = vector.shape_cast %117 : vector<8xf32> to vector<8x1xf32>
    %cst_34 = arith.constant 0.000000e+00 : f32
    %119 = vector.broadcast %cst_34 : f32 to vector<8x1xf32>
    %120 = arith.cmpf ogt, %118, %119 : vector<8x1xf32>
    %121 = tpu.reciprocal %118 {approx = true} : vector<8x1xf32> -> vector<8x1xf32>
    %cst_35 = arith.constant 0.000000e+00 : f32
    %122 = vector.broadcast %cst_35 : f32 to vector<8x1xf32>
    %123 = arith.select %120, %121, %122 : vector<8x1xi1>, vector<8x1xf32>
    %124 = vector.broadcast %123 : vector<8x1xf32> to vector<8x8xf32>
    %125 = arith.mulf %116, %124 : vector<8x8xf32>
    %126 = vector.extract_strided_slice %3 {offsets = [0, 48], sizes = [8, 16], strides = [1, 1]} : vector<8x64xf32> to vector<8x16xf32>
    %cst_36 = arith.constant dense<0.000000e+00> : vector<8x16xf32>
    %127 = tpu.matmul %125, %126, %cst_36 {dimension_numbers = #tpu.dot_dimension_numbers<[1], [0], [0], [1], [0, 0, 1, 1], [], []>} : vector<8x8xf32>, vector<8x16xf32>, vector<8x16xf32> -> vector<8x16xf32>
    %128 = tpu.concatenate %40, %69, %98, %127 in 1 : vector<8x16xf32>, vector<8x16xf32>, vector<8x16xf32>, vector<8x16xf32> -> vector<8x64xf32>
    %129 = arith.addf %4, %128 : vector<8x64xf32>
    %c0_37 = arith.constant 0 : index
    %c0_38 = arith.constant 0 : index
    %130 = vector.load %arg4[%c0_37, %c0_38] : memref<8x64xf32, #tpu.memory_space<vmem>>, vector<8x64xf32>
    tpu.vector_store %arg4[%c0_37, %c0_38], %129 {strides = array<i32>} : memref<8x64xf32, #tpu.memory_space<vmem>>, vector<8x64xf32>,
    return
  }
  func.func @transform_0(%arg0: i32) -> (i32, i32) {
    %c0_i32 = arith.constant 0 : i32
    %c0_i32_0 = arith.constant 0 : i32
    %c0_i32_1 = arith.constant 0 : i32
    return %c0_i32, %c0_i32_0 : i32, i32
  }
  func.func @transform_1(%arg0: i32) -> (i32, i32) {
    %c0_i32 = arith.constant 0 : i32
    %c0_i32_0 = arith.constant 0 : i32
    %c0_i32_1 = arith.constant 0 : i32
    return %c0_i32, %c0_i32_0 : i32, i32
  }
  func.func @transform_2(%arg0: i32) -> (i32, i32) {
    %c0_i32 = arith.constant 0 : i32
    %c0_i32_0 = arith.constant 0 : i32
    %c0_i32_1 = arith.constant 0 : i32
    return %c0_i32, %c0_i32_0 : i32, i32
  }
  func.func @transform_3(%arg0: i32) -> (i32, i32) {
    %c0_i32 = arith.constant 0 : i32
    %c0_i32_0 = arith.constant 0 : i32
    %c0_i32_1 = arith.constant 0 : i32
    return %c0_i32, %c0_i32_0 : i32, i32
  }
}

</mosaic_0001>

<bundles_post_ra>
// kernel: nonlocal_gcn_layer.1
= control target key start
LH: loop header
LB: loop body
LE: loop exit
PB: predicated region body
PF: predicated region fallthrough
CT: control target
= control target key end

     0   :  { %v420_v2 = vmov 6   ;;  %s520_s0 = inlined_call_operand.vmem [shape: f32[8,32], index: 0, kind: input, shape index: {}]   ;;  %s521_s1 = inlined_call_operand.vmem [shape: s8[8,8], index: 1, kind: input, shape index: {}]   ;;  %s522_s2 = inlined_call_operand.vmem [shape: f32[32,136], index: 2, kind: input, shape index: {}]   ;;  %s523_s3 = inlined_call_operand.hbm [shape: f32[8,64], index: 3, kind: output, shape index: {}]  }
   0x1   :  { %v25_v0 = vld [vmem:[%s522_s2 + $0x38] sm:$0xff]  ;;  %v23_v1 = vld [vmem:[%s522_s2 + $0x28] sm:$0xff]  ;;  %375 = vset.pattern.permute.xlu1 %v420_v2 }
   0x2   :  { %62 = vmatpush.msra.mxu1 %v25_v0 }
   0x3   :  { %8 = vsyncpa [#allocation3], 0  ;;  %v21_v3 = vld [vmem:[%s522_s2 + $0x18] sm:$0xff]  ;;  %v421_v4 = vmov 4   ;;  %v19_v5 = vld [vmem:[%s522_s2 + $0x8] sm:$0xff]  ;;  %vm26_vm0 = vcmask 261120  }
   0x4   :  { %373 = vset.pattern.permute.xlu0 %v421_v4  ;;  %63 = vmatpush.msra.mxu1 %v23_v1  ;;  %v17_v6 = vld [vmem:[%s520_s0] sm:$0xff]  ;;  %v422_v8 = vmov 7   ;;  %v423_v9 = vmov 5   ;;  %v24_v10 = vld [vmem:[%s522_s2 + $0x30] sm:$0xff]  ;;  %v424_v17 = vmov 0   ;;  %vm120_vm5 = vcmask 64512  }
   0x5   :  { %v22_v11 = vld [vmem:[%s522_s2 + $0x20] sm:$0xff]  ;;  %42 = vmatpush.msra.mxu0 %v24_v10  ;;  %v20_v12 = vld [vmem:[%s522_s2 + $0x10] sm:$0xff]  ;;  %s427_s4 = smov 96   ;;  %s428_s5 = smov 16   ;;  %vm321_vm12 = vcmask 130048   ;;  %vm324_vm13 = vcmask 392192  }
   0x6   :  { %64 = vmatpush.msra.mxu1 %v21_v3  ;;  %v18_v13 = vld [vmem:[%s522_s2] sm:$0xff]  ;;  %s426_s2 = smov 80   ;;  %s429_s6 = smov 48   ;;  %vm335_vm14 = vcmask 523264  }
   0x7   :  { %43 = vmatpush.msra.mxu0 %v22_v11  ;;  %v70_v14 = vld [vmem:[%s521_s1] sm:$0x3]  ;;  %s425_s1 = smov 112   ;;  %s430_s7 = smov 32  }
   0x8   :  { %65 = vmatpush.msra.mxu1 %v19_v5  ;;  %vm71_vm1 = vnez %v70_v14  ;;  %v72_v56 = vunpack.c.0.s8 %v70_v14  ;;  %s431_s8 = smov 64   ;;  %s432_s9 = smov [#allocation2]  }
   0x9   :  { %354 = vmatmul.msk.f32.vlgmr.msra.gmra.mxu1 %vm26_vm0, %v17_v6  ;;  %44 = vmatpush.msra.mxu0 %v20_v12  ;;  %v116_v18 = vsel %vm71_vm1, 16843009, %v424_v17  ;;  %s342_s10 = sshll.u32 %s432_s9, 4  ;;  %s344_s13 = sshll.u32 %s523_s3, 4  ;;  %s343_s10 = int_to_ptr.vmem [resolvable:$true] %s342_s10  ;;  %s345_s13 = int_to_ptr.hbm [resolvable:$true] %s344_s13 }
   0xa   :  { %v117_v20 = vunpack.c.0.s8 %v116_v18  ;;  %v73_v59 = vcvt.s32.f32 %v72_v56 }
   0xb   :  { %45 = vmatpush.msra.mxu0 %v18_v13 }
   0xc   :  { %353 = vmatmul.msk.f32.vlgmr.msra.gmra.mxu0 %vm26_vm0, %v17_v6  ;;  %vm485_vm2 = vcmp.ne.s32.totalorder %v117_v20, 0 }
  0x86   :  { %v67_v7 = vpop.f32.mrf.mxu1 }
  0x87   :  { %74 = vxpose.xlu2.b32.start.end [1/1] (short) (narrow) %v67_v7, 8  ;;  %210 = vperm.xlu1 %375, %v67_v7  }
  0x88   :  { %108 = vperm.xlu0 %373, %v67_v7  }
  0x89   :  { %v501_v48 = vpop.f32.mrf.mxu0 }
  0x8a   :  { %153 = vmatpush.msra.mxu2 %v501_v48 }
  0x8f   :  { %376 = vset.pattern.permute.xlu1 %v422_v8 }
  0x90   :  { %374 = vset.pattern.permute.xlu0 %v423_v9  ;;  %260 = vperm.xlu1 %376, %v67_v7  }
  0x91   :  { %159 = vperm.xlu0 %374, %v67_v7  }
  0x99   :  { %377 = vset.pattern.permute.xlu0 %v422_v8 }
  0xf9   :  { %v211_v16 = vpop.permute.xlu1 %210 }
  0xfa   :  { %v109_v15 = vpop.permute.xlu0 %108 }
 0x102   :  { %v261_v26 = vpop.permute.xlu1 %260 }
 0x103   :  { %v160_v25 = vpop.permute.xlu0 %159 }
 0x120   :  { %v90_v19 = vpop.trf.xlu2 }
 0x121   :  { %v111_v21 = vperm.slane %v90_v19, 0  ;;  %v162_v22 = vperm.slane %v90_v19, 1  ;;  %v213_v23 = vperm.slane %v90_v19, 2  ;;  %v263_v24 = vperm.slane %v90_v19, 3 }
 0x123   :  { %v214_v27 = vadd.f32 %v213_v23, %v211_v16  ;;  %v112_v28 = vadd.f32 %v111_v21, %v109_v15  ;;  %v163_v29 = vadd.f32 %v162_v22, %v160_v25  ;;  %v264_v31 = vadd.f32 %v263_v24, %v261_v26 }
 0x125   :  { %vm215_vm3 = vcmp.ge.f32.partialorder %v214_v27, 0.0  ;;  %v216_v32 = vmul.f32 0.2, %v214_v27  ;;  %vm113_vm4 = vcmp.ge.f32.partialorder %v112_v28, 0.0  ;;  %v114_v33 = vmul.f32 0.2, %v112_v28 }
 0x126   :  { %vm164_vm6 = vcmp.ge.f32.partialorder %v163_v29, 0.0  ;;  %v165_v34 = vmul.f32 0.2, %v163_v29  ;;  %v266_v40 = vmul.f32 0.2, %v264_v31  ;;  %vm265_vm7 = vcmp.ge.f32.partialorder %v264_v31, 0.0 }
 0x127   :  { %v217_v35 = vsel %vm215_vm3, %v214_v27, %v216_v32  ;;  %v115_v36 = vsel %vm113_vm4, %v112_v28, %v114_v33 }
 0x128   :  { %v218_v37 = vsel %vm485_vm2, %v217_v35, -1e+30  ;;  %v119_v38 = vsel %vm485_vm2, %v115_v36, -1e+30  ;;  %v166_v39 = vsel %vm164_vm6, %v163_v29, %v165_v34  ;;  %v267_v45 = vsel %vm265_vm7, %v264_v31, %v266_v40 }
 0x129   :  { %v219_v41 = vsel %vm120_vm5, %v218_v37, -inf  ;;  %v121_v42 = vsel %vm120_vm5, %v119_v38, -inf  ;;  %v167_v43 = vsel %vm485_vm2, %v166_v39, -1e+30  ;;  %v268_v46 = vsel %vm485_vm2, %v267_v45, -1e+30 }
 0x12a   :  { %220 = vmax.xlane.f32.xlu0 %v219_v41  ;;  %122 = vmax.xlane.f32.xlu2 %v121_v42  ;;  %v168_v44 = vsel %vm120_vm5, %v167_v43, -inf  ;;  %v269_v47 = vsel %vm120_vm5, %v268_v46, -inf }
 0x12b   :  { %169 = vmax.xlane.f32.xlu1 %v168_v44 }
 0x133   :  { %270 = vmax.xlane.f32.xlu1 %v269_v47 }
 0x13e   :  { %183 = vrot.lane.b32.xlu0 %v501_v48, %s425_s1 }
 0x19d   :  { %v123_v49 = vpop.xlane.xlu2 %122  ;;  %v221_v50 = vpop.xlane.xlu0 %220 }
 0x19e   :  { %v124_v51 = vsub.f32 %v119_v38, %v123_v49  ;;  %v170_v52 = vpop.xlane.xlu1 %169  ;;  %v222_v53 = vsub.f32 %v218_v37, %v221_v50 }
 0x19f   :  { %v171_v54 = vsub.f32 %v167_v43, %v170_v52 }
 0x1a0   :  { %v125_v55 = vmul.f32 1.442695, %v124_v51  ;;  %v223_v58 = vmul.f32 1.442695, %v222_v53 }
 0x1a1   :  { %v172_v57 = vmul.f32 1.442695, %v171_v54 }
 0x1a2   :  { %378 = vpow2.f32 %v125_v55 }
 0x1a3   :  { %380 = vpow2.f32 %v172_v57 }
 0x1a4   :  { %382 = vpow2.f32 %v223_v58 }
 0x1a6   :  { %v271_v60 = vpop.xlane.xlu1 %270 }
 0x1a7   :  { %v272_v61 = vsub.f32 %v268_v46, %v271_v60 }
 0x1a8   :  { %v379_v62 = vpop.eup %378 }
 0x1a9   :  { %v381_v63 = vpop.eup %380  ;;  %v273_v0 = vmul.f32 1.442695, %v272_v61  ;;  %v127_v1 = vmul.f32 %v379_v62, %v73_v59 }
 0x1aa   :  { %v174_v2 = vmul.f32 %v381_v63, %v73_v59  ;;  %v383_v4 = vpop.eup %382 }
 0x1ab   :  { %384 = vpow2.f32 %v273_v0  ;;  %v128_v3 = vsel %vm120_vm5, %v127_v1, 0.0  ;;  %v225_v6 = vmul.f32 %v383_v4, %v73_v59 }
 0x1ac   :  { %v175_v5 = vsel %vm120_vm5, %v174_v2, 0.0  ;;  %129 = vadd.xlane.f32.xlu0 %v128_v3 }
 0x1ad   :  { %176 = vadd.xlane.f32.xlu1 %v175_v5  ;;  %v226_v9 = vsel %vm120_vm5, %v225_v6, 0.0 }
 0x1b0   :  { %v184_v11 = vpop.permute.xlu0 %183 }
 0x1b1   :  { %v385_v7 = vpop.eup %384  ;;  %204 = vmatpush.msra.mxu3 %v184_v11 }
 0x1b2   :  { %v275_v8 = vmul.f32 %v385_v7, %v73_v59 }
 0x1b4   :  { %v276_v10 = vsel %vm120_vm5, %v275_v8, 0.0  ;;  %227 = vadd.xlane.f32.xlu0 %v226_v9 }
 0x1b5   :  { %277 = vadd.xlane.f32.xlu1 %v276_v10 }
 0x1c8   :  { %283 = vrot.lane.b32.xlu0 %v501_v48, %s426_s2 }
 0x1ce   :  { %233 = vrot.lane.b32.xlu1 %v501_v48, %s427_s4 }
 0x21f   :  { %v130_v12 = vpop.xlane.xlu0 %129 }
 0x220   :  { %v177_v13 = vpop.xlane.xlu1 %176  ;;  %386 = vrcp.f32 %v130_v12  ;;  %vm131_vm8 = vcmp.gt.f32.partialorder %v130_v12, 0.0 }
 0x221   :  { %388 = vrcp.f32 %v177_v13  ;;  %vm178_vm9 = vcmp.gt.f32.partialorder %v177_v13, 0.0 }
 0x226   :  { %v387_v14 = vpop.eup %386 }
 0x227   :  { %v389_v15 = vpop.eup %388  ;;  %v133_v16 = vsel %vm131_vm8, %v387_v14, 0.0  ;;  %v228_v21 = vpop.xlane.xlu0 %227 }
 0x228   :  { %v180_v17 = vsel %vm178_vm9, %v389_v15, 0.0  ;;  %v134_v18 = vmul.f32 %v133_v16, %v127_v1  ;;  %v278_v20 = vpop.xlane.xlu1 %277  ;;  %vm229_vm11 = vcmp.gt.f32.partialorder %v228_v21, 0.0 }
 0x229   :  { %v181_v19 = vmul.f32 %v180_v17, %v174_v2  ;;  %390 = vrcp.f32 %v278_v20  ;;  %vm279_vm10 = vcmp.gt.f32.partialorder %v278_v20, 0.0 }
 0x22a   :  { %355 = vmatmul.msk.f32.vlgmr.msra.gmra.mxu2 %vm120_vm5, %v134_v18  ;;  %392 = vrcp.f32 %v228_v21 }
 0x22b   :  { %356 = vmatmul.msk.f32.vlgmr.msra.gmra.mxu3 %vm120_vm5, %v181_v19 }
 0x22f   :  { %v391_v22 = vpop.eup %390 }
 0x230   :  { %v281_v23 = vsel %vm279_vm10, %v391_v22, 0.0  ;;  %v393_v24 = vpop.eup %392 }
 0x231   :  { %v282_v25 = vmul.f32 %v281_v23, %v275_v8  ;;  %v231_v27 = vsel %vm229_vm11, %v393_v24, 0.0 }
 0x232   :  { %v232_v28 = vmul.f32 %v231_v27, %v225_v6 }
 0x23a   :  { %v284_v26 = vpop.permute.xlu0 %283 }
 0x23b   :  { %304 = vmatpush.msrb.mxu3 %v284_v26 }
 0x23c   :  { %358 = vmatmul.msk.f32.vlgmr.msrb.gmra.mxu3 %vm120_vm5, %v282_v25 }
 0x240   :  { %v234_v29 = vpop.permute.xlu1 %233 }
 0x241   :  { %254 = vmatpush.msrb.mxu2 %v234_v29 }
 0x242   :  { %357 = vmatmul.msk.f32.vlgmr.msrb.gmra.mxu2 %vm120_vm5, %v232_v28 }
 0x2ad   :  { %v155_v31 = vpop.f32.mrf.mxu2 }
 0x2ae   :  { %v206_v30 = vpop.f32.mrf.mxu3 }
 0x2af   :  { %310 = vrot.lane.b32.xlu1 %v206_v30, %s428_s5 }
 0x2bf   :  { %v306_v32 = vpop.f32.mrf.mxu3 }
 0x2c0   :  { %318 = vrot.lane.b32.xlu1 %v306_v32, %s429_s6 }
 0x2c5   :  { %v256_v33 = vpop.f32.mrf.mxu2 }
 0x2c6   :  { %314 = vrot.lane.b32.xlu0 %v256_v33, %s430_s7 }
 0x321   :  { %v311_v34 = vpop.permute.xlu1 %310 }
 0x322   :  { %v322_v35 = vsel %vm321_vm12, %v155_v31, %v311_v34 }
 0x332   :  { %v319_v37 = vpop.permute.xlu1 %318 }
 0x338   :  { %v315_v36 = vpop.permute.xlu0 %314 }
 0x339   :  { %v323_v38 = vsel %vm26_vm0, %v322_v35, %v315_v36 }
 0x33a   :  { %v325_v39 = vsel %vm324_vm13, %v323_v38, %v319_v37 }
 0x33b   :  { %327 = vrot.lane.b32.xlu0 %v325_v39, %s431_s8 }
 0x3ad   :  { %v328_v40 = vpop.permute.xlu0 %327 }
 0x3ae   :  { %v330_v41 = vadd.f32 %v328_v40, %v501_v48 }
 0x3b0   :  { %332 = vrot.lane.b32.xlu2 %v330_v41, %s431_s8 }
 0x40a   :  { %v333_v42 = vpop.permute.xlu2 %332 }
 0x40b   :  { %336 = vst.msk [vmem:[#allocation2] sm:$0xff] %vm335_vm14, %v333_v42 }
 0x40c   :  { %347 = dma.vmem_to_hbm [thread:$0]  %s343_s10, 128, %s345_s13, [#allocation3]  }
 0x40d   :  { %418 = dma.done.wait [#allocation3], 128  }
 0x40e   :  { %419 = vsyncadd [#allocation3], 4294967168 }
 0x40f   :  { %352 = vsyncpa [#allocation3], 1 }

</bundles_post_ra>
